<compile_context>
chip_gen: v5e
topology: v5e:2x2
jax: 0.10.0
libtpu: 0.0.40
codegen_flags: <defaults>
</compile_context>

<pallas_src>
import functools
import numpy as np

import jax
import jax.numpy as jnp
from jax.experimental import pallas as pl
from jax.experimental.pallas import tpu as pltpu


def _round_up(x, m):
    return ((x + m - 1) // m) * m


def _cdiv(a, b):
    return (a + b - 1) // b


@functools.lru_cache(maxsize=1)
def _vmem_capacity():
    try:
        info = pltpu.get_tpu_info()
        return int(getattr(info, "vmem_capacity_bytes", 128 << 20))
    except Exception:
        return 64 << 20  # conservative fallback


@functools.lru_cache(maxsize=1)
def _vmem_limit():
    # 64 MiB scoped limit on 128-MiB parts (v5e/v6e), 32 MiB on 64-MiB parts (v7x).
    return (64 << 20) if _vmem_capacity() >= (96 << 20) else (32 << 20)


@functools.lru_cache(maxsize=1)
def _row_budget():
    # elementwise / norm row tiles: 1024 on 128-MiB parts, 512 on v7x
    return 1024 if _vmem_capacity() >= (96 << 20) else 512


@functools.lru_cache(maxsize=1)
def _tn_budget():
    # MXU N width: 256 on v6e/v7x, 128 on v5e and older
    try:
        kind = jax.devices()[0].device_kind.lower()
    except Exception:
        kind = ""
    if any(t in kind for t in ("v2", "v3", "v4", "v5")):
        return 128
    return 256


def _pick_tn(cp):
    for t in (_tn_budget(), 128):
        if t <= cp and cp % t == 0:
            return t
    return cp  # full-width (masked) lane block for small / odd channel counts


def _choose_row_tile(ho, wo, cin, tn, stride):
    """Output-row tile for the conv kernel, bounded by a VMEM budget."""
    wpad = stride * wo + 3 - stride
    # per output row: double-buffered bf16 slab rows + f32 output block (x2) + acc
    per_row = 2 * stride * wpad * cin * 2 + 3 * wo * tn * 4
    budget = max(_vmem_limit() // 3, 1 << 20)
    th = min(ho, max(1, budget // max(per_row, 1)))
    while th > 1 and th * wo > 1024:   # keep the MXU/accumulator block moderate
        th = (th + 1) // 2
    return max(th, 1)


# ----------------------------------------------------------------------------
# Kernel 1: image normalization  2*(x/255) - 1   (lane-dense, tiled)
# ----------------------------------------------------------------------------
def _normalize_kernel(x_ref, o_ref):
    o_ref[...] = x_ref[...] * (2.0 / 255.0) - 1.0


@functools.lru_cache(maxsize=None)
def _normalize_call(rows_p, tr, lanes):
    return pl.pallas_call(
        _normalize_kernel,
        out_shape=jax.ShapeDtypeStruct((rows_p, lanes), jnp.float32),
        grid=(rows_p // tr,),
        in_specs=[pl.BlockSpec((tr, lanes), lambda i: (i, 0))],
        out_specs=pl.BlockSpec((tr, lanes), lambda i: (i, 0)),
        compiler_params=pltpu.CompilerParams(
            dimension_semantics=("parallel",),
            vmem_limit_bytes=_vmem_limit()),
    )


def _normalize_image_impl(img_nchw):
    shape = img_nchw.shape
    flat = img_nchw.astype(jnp.float32).reshape(-1)
    total = flat.shape[0]
    lanes = 512
    rows = _cdiv(total, lanes)
    tr = min(_row_budget(), _round_up(rows, 8))
    rows_p = _round_up(rows, tr)
    flat = jnp.pad(flat, (0, rows_p * lanes - total))
    out = _normalize_call(rows_p, tr, lanes)(flat.reshape(rows_p, lanes))
    return out.reshape(-1)[:total].reshape(shape)


normalize_image = jax.jit(_normalize_image_impl)


# ----------------------------------------------------------------------------
# Kernel 2: direct 3x3 convolution (stride 1 or 2, padding 1)
#   - input stays in HBM (pl.ANY); halo row slabs are manually DMA'd into a
#     double-buffered VMEM scratch (no im2col materialization)
#   - 9 shifted-slice bf16 matmuls, f32 accumulation, bias fused
#   - per-channel InstanceNorm sum / sum-of-squares fused as a second output
# ----------------------------------------------------------------------------
def _conv_kernel(x_hbm, w_ref, b_ref, y_ref, st_ref, slab, sem, st_acc,
                 *, stride, th, wo, tn, n_c, hw_valid):
    b = pl.program_id(0)
    j = pl.program_id(1)
    c = pl.program_id(2)
    n_b = pl.num_programs(0)
    n_j = pl.num_programs(1)
    slab_rows = stride * (th - 1) + 3
    lin = b * n_j + j
    slot = lin % 2

    def slab_copy(bi, ji, sl):
        return pltpu.make_async_copy(
            x_hbm.at[bi, pl.ds(ji * (stride * th), slab_rows)],
            slab.at[sl],
            sem.at[sl])

    # prime the very first slab
    @pl.when(jnp.logical_and(lin == 0, c == 0))
    def _prime():
        slab_copy(0, 0, 0).start()

    # on entering a new (batch, row-tile): wait current slab, prefetch the next
    @pl.when(c == 0)
    def _advance():
        slab_copy(0, 0, slot).wait()
        nxt = lin + 1

        @pl.when(nxt < n_b * n_j)
        def _prefetch():
            slab_copy(nxt // n_j, nxt % n_j, 1 - slot).start()

    # ---- 9 shifted-slice matmuls (im2col assembled implicitly in VMEM) ----
    acc = None
    for t in range(9):
        dy, dx = t // 3, t % 3
        if stride == 1:
            xt = slab[slot, pl.ds(dy, th), pl.ds(dx, wo), :]
        else:
            xt = slab[slot, pl.ds(dy, th, stride), pl.ds(dx, wo, stride), :]
        xt = xt.reshape(th * wo, xt.shape[-1])
        d = jnp.dot(xt, w_ref[t], preferred_element_type=jnp.float32)
        acc = d if acc is None else acc + d
    acc = acc + b_ref[...]
    y_ref[0] = acc

    # ---- fused InstanceNorm statistics (masked to valid output rows) ----
    @pl.when(jnp.logical_and(j == 0, c == 0))
    def _zero_stats():
        st_acc[...] = jnp.zeros_like(st_acc)

    rows = j * (th * wo) + jax.lax.broadcasted_iota(jnp.int32, (th * wo, 1), 0)
    am = jnp.where(rows < hw_valid, acc, 0.0)
    ssum = jnp.sum(am, axis=0, keepdims=True)
    ssq = jnp.sum(am * am, axis=0, keepdims=True)
    if n_c == 1:
        st_acc[0:1, :] += ssum
        st_acc[1:2, :] += ssq
    else:
        off = pl.multiple_of(c * tn, 128)
        st_acc[0:1, pl.ds(off, tn)] += ssum
        st_acc[1:2, pl.ds(off, tn)] += ssq

    @pl.when(jnp.logical_and(j == n_j - 1, c == pl.num_programs(2) - 1))
    def _flush_stats():
        st_ref[0] = st_acc[...]


@functools.lru_cache(maxsize=None)
def _conv_call(n, n_j, n_c, th, wo, wpad, cin, cp, tn, stride, hw_valid):
    slab_rows = stride * (th - 1) + 3
    hwp = n_j * th * wo
    kern = functools.partial(_conv_kernel, stride=stride, th=th, wo=wo, tn=tn,
                             n_c=n_c, hw_valid=hw_valid)
    return pl.pallas_call(
        kern,
        out_shape=(jax.ShapeDtypeStruct((n, hwp, cp), jnp.float32),
                   jax.ShapeDtypeStruct((n, 8, cp), jnp.float32)),
        grid=(n, n_j, n_c),
        in_specs=[
            pl.BlockSpec(memory_space=pl.ANY),                       # padded NHWC (HBM)
            pl.BlockSpec((9, cin, tn), lambda b, j, c: (0, 0, c)),   # weights
            pl.BlockSpec((1, tn), lambda b, j, c: (0, c)),           # bias
        ],
        out_specs=(
            pl.BlockSpec((1, th * wo, tn), lambda b, j, c: (b, j, c)),
            pl.BlockSpec((1, 8, cp), lambda b, j, c: (b, 0, 0)),
        ),
        scratch_shapes=[
            pltpu.VMEM((2, slab_rows, wpad, cin), jnp.bfloat16),
            pltpu.SemaphoreType.DMA((2,)),
            pltpu.VMEM((8, cp), jnp.float32),
        ],
        compiler_params=pltpu.CompilerParams(
            dimension_semantics=("arbitrary", "arbitrary", "arbitrary"),
            vmem_limit_bytes=_vmem_limit()),
    )


def _conv3x3_raw(x_nhwc, w, b, stride=1):
    """Returns (flat conv output (N, HWpad, Cout) f32, stats (N,8,Cout), ho, wo, tile_rows)."""
    n, h, wd, cin = x_nhwc.shape
    cout = w.shape[-1]
    ho = (h - 1) // stride + 1
    wo = (wd - 1) // stride + 1
    cp = cout                       # no channel padding (masked stores are cheaper)
    tn = _pick_tn(cp)
    n_c = cp // tn
    th = _choose_row_tile(ho, wo, cin, tn, stride)
    n_j = _cdiv(ho, th)
    if n_j > 1:
        th = max(8, (th // 8) * 8)  # keep tiled row blocks 8-aligned
        n_j = _cdiv(ho, th)
    hw_valid = ho * wo

    hpad = stride * th * n_j + 3 - stride
    wpad = stride * wo + 3 - stride
    xb = x_nhwc.astype(jnp.bfloat16)
    xp = jnp.pad(xb, ((0, 0), (1, hpad - 1 - h), (1, wpad - 1 - wd), (0, 0)))

    wk = w.reshape(9, cin, cout).astype(jnp.bfloat16)
    bk = b.reshape(1, cout).astype(jnp.float32)

    y, stats = _conv_call(n, n_j, n_c, th, wo, wpad, cin, cp, tn, stride,
                          hw_valid)(xp, wk, bk)
    return y, stats, ho, wo, th * wo


def conv3x3(x_nhwc, w, b, stride=1):
    """Plain 3x3 conv, padding=1 -> (N, Ho, Wo, Cout) float32."""
    n = x_nhwc.shape[0]
    cout = w.shape[-1]
    y, _, ho, wo, _ = _conv3x3_raw(x_nhwc, w, b, stride)
    hw = ho * wo
    if y.shape[1] != hw:
        y = y[:, :hw, :]
    return y.reshape(n, ho, wo, cout)


# ----------------------------------------------------------------------------
# Kernel 3: InstanceNorm apply (+ReLU, optional fused residual add)
# ----------------------------------------------------------------------------
def _inorm_kernel(x_ref, s_ref, o_ref, *, inv_count, eps, relu):
    x = x_ref[0]
    mean = s_ref[0, 0:1, :] * inv_count
    var = s_ref[0, 1:2, :] * inv_count - mean * mean
    inv = jax.lax.rsqrt(jnp.maximum(var, 0.0) + eps)
    y = (x - mean) * inv
    if relu:
        y = jnp.maximum(y, 0.0)
    o_ref[0] = y


def _inorm_res_kernel(x_ref, s_ref, r_ref, o_ref, *, inv_count, eps, relu):
    x = x_ref[0]
    mean = s_ref[0, 0:1, :] * inv_count
    var = s_ref[0, 1:2, :] * inv_count - mean * mean
    inv = jax.lax.rsqrt(jnp.maximum(var, 0.0) + eps)
    y = (x - mean) * inv
    if relu:
        y = jnp.maximum(y, 0.0)
    o_ref[0] = y + r_ref[0]


@functools.lru_cache(maxsize=None)
def _inorm_call(n, hwp, c, tm, relu, count, with_res):
    if with_res:
        kern = functools.partial(_inorm_res_kernel, inv_count=1.0 / count,
                                 eps=1e-5, relu=relu)
        in_specs = [pl.BlockSpec((1, tm, c), lambda i, j: (i, j, 0)),
                    pl.BlockSpec((1, 8, c), lambda i, j: (i, 0, 0)),
                    pl.BlockSpec((1, tm, c), lambda i, j: (i, j, 0))]
    else:
        kern = functools.partial(_inorm_kernel, inv_count=1.0 / count,
                                 eps=1e-5, relu=relu)
        in_specs = [pl.BlockSpec((1, tm, c), lambda i, j: (i, j, 0)),
                    pl.BlockSpec((1, 8, c), lambda i, j: (i, 0, 0))]
    return pl.pallas_call(
        kern,
        out_shape=jax.ShapeDtypeStruct((n, hwp, c), jnp.float32),
        grid=(n, hwp // tm),
        in_specs=in_specs,
        out_specs=pl.BlockSpec((1, tm, c), lambda i, j: (i, j, 0)),
        compiler_params=pltpu.CompilerParams(
            dimension_semantics=("parallel", "parallel"),
            vmem_limit_bytes=_vmem_limit()),
    )


def conv3x3_in_relu(x_nhwc, w, b, stride=1, residual=None):
    """3x3 conv -> InstanceNorm2d -> ReLU (+ optional fused residual add)."""
    n = x_nhwc.shape[0]
    cout = w.shape[-1]
    y, stats, ho, wo, tile_rows = _conv3x3_raw(x_nhwc, w, b, stride)
    hw = ho * wo
    hwp = y.shape[1]
    if residual is not None:
        r = residual.reshape(n, hw, cout).astype(jnp.float32)
        if hwp != hw:
            r = jnp.pad(r, ((0, 0), (0, hwp - hw), (0, 0)))
        out = _inorm_call(n, hwp, cout, tile_rows, True, hw, True)(y, stats, r)
    else:
        out = _inorm_call(n, hwp, cout, tile_rows, True, hw, False)(y, stats)
    if hwp != hw:
        out = out[:, :hw, :]
    return out.reshape(n, ho, wo, cout)


# ----------------------------------------------------------------------------
# Standalone InstanceNorm(+ReLU) (two tiled passes) -- used for bn_relu(fea)
# ----------------------------------------------------------------------------
def _inorm_stats_kernel(x_ref, s_ref):
    @pl.when(pl.program_id(1) == 0)
    def _():
        s_ref[...] = jnp.zeros_like(s_ref)
    x = x_ref[0]
    s_ref[0, 0:1, :] += jnp.sum(x, axis=0, keepdims=True)
    s_ref[0, 1:2, :] += jnp.sum(x * x, axis=0, keepdims=True)


@functools.lru_cache(maxsize=None)
def _inorm_stats_call(n, hwp, c, tm):
    return pl.pallas_call(
        _inorm_stats_kernel,
        out_shape=jax.ShapeDtypeStruct((n, 8, c), jnp.float32),
        grid=(n, hwp // tm),
        in_specs=[pl.BlockSpec((1, tm, c), lambda i, j: (i, j, 0))],
        out_specs=pl.BlockSpec((1, 8, c), lambda i, j: (i, 0, 0)),
        compiler_params=pltpu.CompilerParams(
            dimension_semantics=("parallel", "arbitrary"),
            vmem_limit_bytes=_vmem_limit()),
    )


def instance_norm_relu(x_nhwc, relu=True):
    n, h, w, c = x_nhwc.shape
    hw = h * w
    tm = min(_row_budget(), _round_up(hw, 8))
    hwp = _round_up(hw, tm)
    x2 = x_nhwc.reshape(n, hw, c).astype(jnp.float32)
    if hwp != hw:
        x2 = jnp.pad(x2, ((0, 0), (0, hwp - hw), (0, 0)))  # zero rows don't change sums
    stats = _inorm_stats_call(n, hwp, c, tm)(x2)
    y = _inorm_call(n, hwp, c, tm, bool(relu), hw, False)(x2, stats)
    if hwp != hw:
        y = y[:, :hw, :]
    return y.reshape(n, h, w, c)


# ----------------------------------------------------------------------------
# Kernel 4: convex-combination flow upsampling (SepFlow.upsample_flow)
#   HW on the lane axis; softmax over the 9 taps on the VPU; halves stored
#   directly into the 128-row lane-dense output slab.
# ----------------------------------------------------------------------------
def _upsample_kernel(m_ref, f_ref, o_ref):
    m = m_ref[0]                                       # (9, 64, TW)
    mmax = jnp.max(m, axis=0, keepdims=True)
    e = jnp.exp(m - mmax)
    pm = e / jnp.sum(e, axis=0)[None]                  # exact softmax over the 9 taps
    f = f_ref[0]                                       # (2, 9, TW)
    o_ref[0, 0:64] = jnp.sum(pm * f[0][:, None, :], axis=0)
    o_ref[0, 64:128] = jnp.sum(pm * f[1][:, None, :], axis=0)


@functools.lru_cache(maxsize=None)
def _upsample_call(n, hwp, tw):
    return pl.pallas_call(
        _upsample_kernel,
        out_shape=jax.ShapeDtypeStruct((n, 128, hwp), jnp.float32),
        grid=(n, hwp // tw),
        in_specs=[
            pl.BlockSpec((1, 9, 64, tw), lambda i, j: (i, 0, 0, j)),
            pl.BlockSpec((1, 2, 9, tw), lambda i, j: (i, 0, 0, j)),
        ],
        out_specs=pl.BlockSpec((1, 128, tw), lambda i, j: (i, 0, j)),
        compiler_params=pltpu.CompilerParams(
            dimension_semantics=("parallel", "parallel"),
            vmem_limit_bytes=_vmem_limit()),
    )


def _upsample_flow_impl(flow, mask):
    """flow: (N,2,H,W), mask: (N,576,H,W) -> (N,2,8H,8W)."""
    n, _, h, w = flow.shape
    hw = h * w
    m = mask.reshape(n, 9, 64, hw).astype(jnp.float32)
    fp = jnp.pad(8.0 * flow, ((0, 0), (0, 0), (1, 1), (1, 1)))
    taps = [fp[:, :, dy:dy + h, dx:dx + w].reshape(n, 2, hw)
            for dy in range(3) for dx in range(3)]     # F.unfold tap ordering
    f9 = jnp.stack(taps, axis=2)                       # (N, 2, 9, HW)

    tw = hw if hw <= _row_budget() else _row_budget()
    hwp = _round_up(hw, tw)
    if hwp != hw:
        m = jnp.pad(m, ((0, 0), (0, 0), (0, 0), (0, hwp - hw)))
        f9 = jnp.pad(f9, ((0, 0), (0, 0), (0, 0), (0, hwp - hw)))

    out = _upsample_call(n, hwp, tw)(m, f9)            # (N, 128, HWp)
    out = out[:, :, :hw].reshape(n, 2, 8, 8, h, w)
    out = jnp.transpose(out, (0, 1, 4, 2, 5, 3)).reshape(n, 2, 8 * h, 8 * w)
    return out


upsample_flow_convex = jax.jit(_upsample_flow_impl)


# ----------------------------------------------------------------------------
# SepFlow.initialize_flow (coords_grid) - pure iota glue
# ----------------------------------------------------------------------------
def coords_grid(batch, ht, wd):
    ys, xs = jnp.meshgrid(jnp.arange(ht, dtype=jnp.float32),
                          jnp.arange(wd, dtype=jnp.float32), indexing="ij")
    coords = jnp.stack([xs, ys], axis=0)
    return jnp.broadcast_to(coords[None], (batch, 2, ht, wd))


def initialize_flow(img_nchw):
    n, _, h, w = img_nchw.shape
    return coords_grid(n, h // 8, w // 8), coords_grid(n, h // 8, w // 8)


# ----------------------------------------------------------------------------
# Guidance module parameters (deterministic synthetic init) and forward
# ----------------------------------------------------------------------------
def init_conv(key, cin, cout):
    wk, bk = jax.random.split(key)
    w = jax.random.normal(wk, (3, 3, cin, cout), jnp.float32) / np.sqrt(9.0 * cin)
    b = 0.01 * jax.random.normal(bk, (cout,), jnp.float32)
    return {"w": w, "b": b}


def init_guidance_params(key, channels=256):
    inner = channels // 4
    wsize = 20
    it = iter(jax.random.split(key, 32))
    p = {}
    p["conv0"] = [init_conv(next(it), 3, 16),
                  init_conv(next(it), 16, channels // 4),
                  init_conv(next(it), channels // 4, channels // 2),
                  init_conv(next(it), channels // 2, channels)]
    p["conv1"] = [init_conv(next(it), channels * 2, inner)]
    p["conv2"] = [init_conv(next(it), inner, inner), init_conv(next(it), inner, inner)]
    p["conv3"] = [init_conv(next(it), inner, inner), init_conv(next(it), inner, inner)]
    p["conv11"] = [init_conv(next(it), inner, inner * 2)]
    p["conv12"] = [init_conv(next(it), inner * 2, inner * 2),
                   init_conv(next(it), inner * 2, inner * 2)]
    p["weights"] = [init_conv(next(it), inner, inner), init_conv(next(it), inner, wsize)]
    for name in ("weight_sg1", "weight_sg2", "weight_sg3"):
        p[name] = [init_conv(next(it), inner, inner),
                   init_conv(next(it), inner, wsize * 2)]
    for name in ("weight_sg11", "weight_sg12"):
        p[name] = [init_conv(next(it), inner * 2, inner * 2),
                   init_conv(next(it), inner * 2, wsize * 2)]
    return p


def _cir(x, prm, stride=1, residual=None):
    """conv3x3 -> InstanceNorm2d -> ReLU (residual add fused when given)."""
    return conv3x3_in_relu(x, prm["w"], prm["b"], stride=stride, residual=residual)


def _head_single(x, prms):
    """conv+IN+ReLU followed by a plain conv (the `weights` head)."""
    h = _cir(x, prms[0])
    return conv3x3(h, prms[1]["w"], prms[1]["b"])


def _heads_fused(x, head_list):
    """Fuse several conv+IN+ReLU+conv heads that share the same input.

    First convs concatenate along Cout (IN is per-channel, so normalizing the
    concat equals normalizing each head separately); the second convs become one
    block-diagonal conv -> a single wide, lane-dense output store.
    """
    mids = [hp[0]["w"].shape[-1] for hp in head_list]
    outs = [hp[1]["w"].shape[-1] for hp in head_list]
    w0 = jnp.concatenate([hp[0]["w"] for hp in head_list], axis=-1)
    b0 = jnp.concatenate([hp[0]["b"] for hp in head_list], axis=-1)
    h = conv3x3_in_relu(x, w0, b0)

    mid_total, out_total = sum(mids), sum(outs)
    w1 = jnp.zeros((3, 3, mid_total, out_total), jnp.float32)
    mo = oo = 0
    for hp, m, o in zip(head_list, mids, outs):
        w1 = w1.at[:, :, mo:mo + m, oo:oo + o].set(hp[1]["w"])
        mo += m
        oo += o
    b1 = jnp.concatenate([hp[1]["b"] for hp in head_list], axis=-1)
    y = conv3x3(h, w1, b1)

    res, oo = [], 0
    for o in outs:
        res.append(y[..., oo:oo + o])
        oo += o
    return res


def _guidance_forward_impl(p, fea_nchw, img_nchw):
    wsize = 20
    to_nhwc = lambda t: jnp.transpose(t, (0, 2, 3, 1))
    to_nchw = lambda t: jnp.transpose(t, (0, 3, 1, 2))
    fea = to_nhwc(fea_nchw)
    img = to_nhwc(img_nchw)

    # conv0 (stride-2 convs computed directly with strided taps inside the kernel)
    x = _cir(img, p["conv0"][0], stride=1)
    x = _cir(x, p["conv0"][1], stride=2)
    x = _cir(x, p["conv0"][2], stride=2)
    x = _cir(x, p["conv0"][3], stride=2)

    fea_n = instance_norm_relu(fea, relu=True)       # self.bn_relu(fea)
    x = jnp.concatenate([fea_n, x], axis=-1)         # cat along channels
    x = _cir(x, p["conv1"][0])
    rem = x
    x = _cir(_cir(x, p["conv2"][0]), p["conv2"][1], residual=rem)
    rem = x
    guid = _head_single(x, p["weights"])
    x = _cir(_cir(x, p["conv3"][0]), p["conv3"][1], residual=rem)
    sg1, sg2, sg3 = _heads_fused(
        x, [p["weight_sg1"], p["weight_sg2"], p["weight_sg3"]])
    x = _cir(x, p["conv11"][0], stride=2)
    rem = x
    x = _cir(_cir(x, p["conv12"][0]), p["conv12"][1], residual=rem)
    sg11, sg12 = _heads_fused(x, [p["weight_sg11"], p["weight_sg12"]])

    def split_uv(t):
        return to_nchw(t[..., :wsize]), to_nchw(t[..., wsize:])

    sg1_u, sg1_v = split_uv(sg1)
    sg2_u, sg2_v = split_uv(sg2)
    sg3_u, sg3_v = split_uv(sg3)
    sg11_u, sg11_v = split_uv(sg11)
    sg12_u, sg12_v = split_uv(sg12)
    guid_u = dict(sg1=sg1_u, sg2=sg2_u, sg3=sg3_u, sg11=sg11_u, sg12=sg12_u)
    guid_v = dict(sg1=sg1_v, sg2=sg2_v, sg3=sg3_v, sg11=sg11_v, sg12=sg12_v)
    return to_nchw(guid), guid_u, guid_v


guidance_forward = jax.jit(_guidance_forward_impl)


# ----------------------------------------------------------------------------
# demo
# ----------------------------------------------------------------------------
if __name__ == "__main__":
    key = jax.random.PRNGKey(0)
    kimg1, kimg2, kfea, kflow, kmask, kparam = jax.random.split(key, 6)

    N, H, W = 2, 32, 32
    image1 = jax.random.uniform(kimg1, (N, 3, H, W), jnp.float32, 0.0, 255.0)
    image2 = jax.random.uniform(kimg2, (N, 3, H, W), jnp.float32, 0.0, 255.0)

    params = init_guidance_params(kparam, channels=256)

    # SepFlow.forward preamble: image normalization (Pallas elementwise kernel)
    img1n = normalize_image(image1)
    img2n = normalize_image(image2)

    # TODO(synk): fnet/cnet (BasicEncoder) not provided -> synthetic fmap1 stand-in
    fmap1 = jax.random.normal(kfea, (N, 256, H // 8, W // 8), jnp.float32)

    # Guidance (conv / instance-norm hot path in Pallas)
    guid, guid_u, guid_v = guidance_forward(params, fmap1, img1n)

    # SepFlow.initialize_flow
    coords0, coords1 = initialize_flow(image1)

    # SepFlow.upsample_flow on a synthetic coarse flow / up-mask
    flow = jax.random.normal(kflow, (N, 2, H // 8, W // 8), jnp.float32)
    mask = jax.random.normal(kmask, (N, 9 * 64, H // 8, W // 8), jnp.float32)
    flow_up = upsample_flow_convex(flow, mask)

    outs = (img1n, img2n, guid, guid_u, guid_v, coords0, coords1, flow_up)
    jax.block_until_ready(outs)

    assert img1n.shape == (N, 3, H, W)
    assert guid.shape == (N, 20, H // 8, W // 8)
    assert guid_u["sg1"].shape == (N, 20, H // 8, W // 8)
    assert guid_u["sg11"].shape == (N, 20, H // 16, W // 16)
    assert guid_v["sg12"].shape == (N, 20, H // 16, W // 16)
    assert coords0.shape == (N, 2, H // 8, W // 8)
    assert flow_up.shape == (N, 2, H, W)
    print("KERNEL_OK")
</pallas_src>

<mosaic_0001>
module attributes {stable_mosaic.version = 11 : i64} {
  func.func @_normalize_kernel(%arg0: i32, %arg1: memref<16x512xf32, #tpu.memory_space<vmem>>, %arg2: memref<16x512xf32, #tpu.memory_space<vmem>>) attributes {dimension_semantics = [#tpu.dimension_semantics<parallel>], iteration_bounds = array<i64: 1>, scalar_prefetch = 0 : i64, scratch_operands = 0 : i64, tpu.core_type = #tpu.core_type<tc>, window_params = [{transform_indices = @transform_0, window_bounds = array<i64: 16, 512>}, {transform_indices = @transform_1, window_bounds = array<i64: 16, 512>}]} {
    %c0 = arith.constant 0 : index
    %c0_0 = arith.constant 0 : index
    %0 = vector.load %arg1[%c0, %c0_0] : memref<16x512xf32, #tpu.memory_space<vmem>>, vector<16x512xf32>
    %cst = arith.constant 0.00784313772 : f32
    %1 = vector.broadcast %cst : f32 to vector<16x512xf32>
    %2 = arith.mulf %0, %1 : vector<16x512xf32>
    %cst_1 = arith.constant 1.000000e+00 : f32
    %3 = vector.broadcast %cst_1 : f32 to vector<16x512xf32>
    %4 = arith.subf %2, %3 : vector<16x512xf32>
    %c0_2 = arith.constant 0 : index
    %c0_3 = arith.constant 0 : index
    %5 = vector.load %arg2[%c0_2, %c0_3] : memref<16x512xf32, #tpu.memory_space<vmem>>, vector<16x512xf32>
    tpu.vector_store %arg2[%c0_2, %c0_3], %4 {strides = array<i32>} : memref<16x512xf32, #tpu.memory_space<vmem>>, vector<16x512xf32>,
    return
  }
  func.func @transform_0(%arg0: i32) -> (i32, i32) {
    %c0_i32 = arith.constant 0 : i32
    %c0_i32_0 = arith.constant 0 : i32
    return %arg0, %c0_i32 : i32, i32
  }
  func.func @transform_1(%arg0: i32) -> (i32, i32) {
    %c0_i32 = arith.constant 0 : i32
    %c0_i32_0 = arith.constant 0 : i32
    return %arg0, %c0_i32 : i32, i32
  }
}

</mosaic_0001>

<bundles_post_ra>
// kernel: _normalize_image_impl.1
= control target key start
LH: loop header
LB: loop body
LE: loop exit
PB: predicated region body
PF: predicated region fallthrough
CT: control target
= control target key end

     0   :  { %s110_s0 = inlined_call_operand.vmem [shape: f32[16,512], index: 0, kind: input, shape index: {}]   ;;  %s111_s1 = inlined_call_operand.vmem [shape: f32[16,512], index: 1, kind: output, shape index: {}]  }
   0x1   :  { %v8_v0 = vld [vmem:[%s110_s0] sm:$0xff]  ;;  %v9_v1 = vld [vmem:[%s110_s0 + $0x8] sm:$0xff]  ;;  %v10_v2 = vld [vmem:[%s110_s0 + $0x10] sm:$0xff] }
   0x2   :  { %v16_v3 = vmul.f32 0.007843138, %v8_v0  ;;  %v17_v4 = vmul.f32 0.007843138, %v9_v1  ;;  %v18_v5 = vmul.f32 0.007843138, %v10_v2 }
   0x3   :  { %v11_v6 = vld [vmem:[%s110_s0 + $0x18] sm:$0xff]  ;;  %v12_v7 = vld [vmem:[%s110_s0 + $0x20] sm:$0xff]  ;;  %v13_v8 = vld [vmem:[%s110_s0 + $0x28] sm:$0xff] }
   0x4   :  { %v44_v9 = vadd.f32 -1.0, %v16_v3  ;;  %v45_v10 = vadd.f32 -1.0, %v17_v4  ;;  %v46_v11 = vadd.f32 -1.0, %v18_v5  ;;  %v19_v12 = vmul.f32 0.007843138, %v11_v6  ;;  %v14_v13 = vld [vmem:[%s110_s0 + $0x30] sm:$0xff] }
   0x5   :  { %v20_v14 = vmul.f32 0.007843138, %v12_v7  ;;  %v21_v15 = vmul.f32 0.007843138, %v13_v8  ;;  %v22_v16 = vmul.f32 0.007843138, %v14_v13 }
   0x6   :  { %32 = vst [vmem:[%s111_s1] sm:$0xff] %v44_v9  ;;  %v47_v17 = vadd.f32 -1.0, %v19_v12  ;;  %v15_v18 = vld [vmem:[%s110_s0 + $0x38] sm:$0xff] }
   0x7   :  { %33 = vst [vmem:[%s111_s1 + $0x8] sm:$0xff] %v45_v10  ;;  %v48_v19 = vadd.f32 -1.0, %v20_v14  ;;  %v49_v20 = vadd.f32 -1.0, %v21_v15  ;;  %v23_v21 = vmul.f32 0.007843138, %v15_v18  ;;  %v50_v22 = vadd.f32 -1.0, %v22_v16 }
   0x8   :  { %34 = vst [vmem:[%s111_s1 + $0x10] sm:$0xff] %v46_v11 }
   0x9   :  { %35 = vst [vmem:[%s111_s1 + $0x18] sm:$0xff] %v47_v17  ;;  %v51_v23 = vadd.f32 -1.0, %v23_v21 }
   0xa   :  { %36 = vst [vmem:[%s111_s1 + $0x20] sm:$0xff] %v48_v19 }
   0xb   :  { %37 = vst [vmem:[%s111_s1 + $0x28] sm:$0xff] %v49_v20 }
   0xc   :  { %38 = vst [vmem:[%s111_s1 + $0x30] sm:$0xff] %v50_v22 }
   0xd   :  { %39 = vst [vmem:[%s111_s1 + $0x38] sm:$0xff] %v51_v23 }

</bundles_post_ra>
